<compile_context>
chip_gen: v7x
topology: tpu7x:2x2x1
jax: 0.10.0
libtpu: 0.0.40
codegen_flags: <defaults>
</compile_context>

<pallas_src>
import functools

import jax
import jax.numpy as jnp
import numpy as np
from jax.experimental import pallas as pl
from jax.experimental.pallas import tpu as pltpu

LANE = 128


def _round_up(x, m):
    return ((x + m - 1) // m) * m


def _tpu_generation():
    """Best-effort TPU generation tag: 'v5' / 'v6' / 'v7' / 'other'."""
    try:
        kind = jax.devices()[0].device_kind.lower()
    except Exception:
        return "other"
    for g in ("v7", "v6", "v5"):
        if g in kind:
            return g
    return "other"


def _vmem_limit_bytes(gen):
    """Scoped-VMEM limit: physical capacity minus ~12 MiB headroom, <= 110 MiB."""
    headroom = 12 << 20
    try:
        cap = int(pltpu.get_tpu_info().vmem_capacity_bytes)
    except Exception:
        cap = (64 << 20) if gen == "v7" else (128 << 20)
    return max(32 << 20, min(cap - headroom, 110 << 20))


def _head_kernel(x_ref, w1_ref, b1_ref, w2_ref, b2_ref, o_ref, acc_ref, *,
                 act_dtype):
    """One (row-tile, hidden-chunk) grid step of y = tanh(x@W1+b1)@W2 + b2."""
    c = pl.program_id(1)

    @pl.when(c == 0)
    def _init():
        acc_ref[...] = jnp.zeros_like(acc_ref)

    # h_c = tanh(x @ W1[:, chunk c] + b1[chunk c])   (f32 MXU accumulation)
    h = jnp.dot(x_ref[...], w1_ref[...], preferred_element_type=jnp.float32)
    h = jnp.tanh((h + b1_ref[...]).astype(act_dtype))
    # y += h_c @ W2[chunk c, :]
    acc_ref[...] += jnp.dot(h.astype(w2_ref.dtype), w2_ref[...],
                            preferred_element_type=jnp.float32)

    @pl.when(c == pl.num_programs(1) - 1)
    def _finalize():
        o_ref[...] = (acc_ref[...] + b2_ref[...]).astype(o_ref.dtype)


def model_head_forward(features, w1, b1, w2, b2, *, tm=None, tc=None,
                       compute_dtype=None):
    """ModelHead forward (inference-mode dropout = identity).

    features: [B, T, H]; w1: [H, H] (in, out); b1: [H]; w2: [H, L]; b2: [L].
    Returns [B, T, L] in features.dtype.
    """
    B, T, H = features.shape
    L = w2.shape[1]
    M = B * T
    gen = _tpu_generation()

    # bf16 MXU inputs (f32 accumulation) only at realistic hidden sizes.
    # NOTE: the bf16 path is numerically looser (~1e-2 abs) than the f32 torch ref.
    if compute_dtype is None:
        compute_dtype = jnp.bfloat16 if H >= 256 else jnp.float32
    is_bf16 = np.dtype(compute_dtype) == jnp.bfloat16
    cd_bytes = np.dtype(compute_dtype).itemsize
    out_bytes = np.dtype(features.dtype).itemsize

    # bf16 tanh (bf16 EUP path) on v6e/v7x; keep f32 tanh on v5e / f32 compute.
    act_dtype = jnp.bfloat16 if (is_bf16 and gen != "v5") else jnp.float32

    # Lane-dense output: pad labels to the minimal multiple of 128.
    Lp = _round_up(max(L, 1), LANE)

    # Hidden (dense-output) dim chunking: resident weight is H*tc per step.
    if tc is None:
        tc = 512
    tc = H if H <= tc else _round_up(tc, LANE)

    # Row tiling: MXU-pass aligned (multiple of 256), bf16 sublane minimum 16.
    sub = 16 if is_bf16 else 8
    if tm is None:
        tm = 2048 if gen in ("v5", "v6") else 1024
    m_min = _round_up(M, sub)
    if m_min <= 256:
        tm = m_min                                     # single small tile
    else:
        tm = _round_up(min(tm, _round_up(M, 256)), 256)
        if gen == "v7":
            # 2 TensorCores per chip: make sure the "parallel" row axis splits.
            tm = max(256, min(tm, _round_up(pl.cdiv(M, 2), 256)))

    # Crude VMEM budget: shrink tm, then tc, until the working set fits.
    vmem_limit = _vmem_limit_bytes(gen)

    def vmem_est(tm_, tc_):
        return (2 * tm_ * H * cd_bytes        # x tile (double-buffered)
                + 2 * H * tc_ * cd_bytes      # W1 chunk
                + 2 * tc_ * Lp * cd_bytes     # W2 chunk
                + tm_ * Lp * 4                # f32 accumulator scratch
                + 2 * tm_ * Lp * out_bytes    # output tile
                + tm_ * tc_ * 4)              # h intermediate headroom

    budget = int(0.8 * vmem_limit)
    while vmem_est(tm, tc) > budget:
        if tm > 256:
            tm = max(256, _round_up(tm // 2, 256))
        elif tc > LANE:
            tc = max(LANE, _round_up(tc // 2, LANE))
        else:
            break

    Hc = _round_up(H, tc)
    grid_c = Hc // tc
    grid_m = pl.cdiv(M, tm)
    Mp = grid_m * tm

    # Operand prep: pad rows to Mp, dense-output dim to Hc, labels to Lp.
    # (Zero-padded W1 cols / b1 / W2 rows contribute exactly 0 to the output.)
    x2d = features.reshape(M, H).astype(compute_dtype)
    if Mp != M:
        x2d = jnp.pad(x2d, ((0, Mp - M), (0, 0)))
    w1p = jnp.pad(w1, ((0, 0), (0, Hc - H))).astype(compute_dtype)
    b1p = jnp.pad(b1, (0, Hc - H)).reshape(1, Hc).astype(jnp.float32)
    w2p = jnp.pad(w2, ((0, Hc - H), (0, Lp - L))).astype(compute_dtype)
    b2p = jnp.pad(b2, (0, Lp - L)).reshape(1, Lp).astype(jnp.float32)

    # Deeper x pipeline only in the memory-bound f32 small-H regime on v5e.
    if gen == "v5" and not is_bf16 and H < 256 and grid_m >= 4:
        x_spec = pl.BlockSpec((tm, H), lambda i, c: (i, 0),
                              pipeline_mode=pl.Buffered(3))
    else:
        x_spec = pl.BlockSpec((tm, H), lambda i, c: (i, 0))

    cost = pl.CostEstimate(
        flops=int(2 * Mp * Hc * (H + Lp)),
        transcendentals=int(Mp * Hc),
        bytes_accessed=int(Mp * H * cd_bytes + (H * Hc + Hc * Lp) * cd_bytes
                           + Mp * Lp * out_bytes),
    )

    kernel = functools.partial(_head_kernel, act_dtype=act_dtype)

    out2d = pl.pallas_call(
        kernel,
        out_shape=jax.ShapeDtypeStruct((Mp, Lp), features.dtype),
        grid_spec=pltpu.PrefetchScalarGridSpec(
            num_scalar_prefetch=0,
            grid=(grid_m, grid_c),
            in_specs=[
                x_spec,                                        # (tm, H) rows
                pl.BlockSpec((H, tc), lambda i, c: (0, c)),    # W1 column chunk
                pl.BlockSpec((1, tc), lambda i, c: (0, c)),    # b1 chunk
                pl.BlockSpec((tc, Lp), lambda i, c: (c, 0)),   # W2 row chunk
                pl.BlockSpec((1, Lp), lambda i, c: (0, 0)),    # b2 (invariant)
            ],
            out_specs=pl.BlockSpec((tm, Lp), lambda i, c: (i, 0)),
            scratch_shapes=[pltpu.VMEM((tm, Lp), jnp.float32)],
        ),
        compiler_params=pltpu.CompilerParams(
            dimension_semantics=("parallel", "arbitrary"),
            vmem_limit_bytes=int(vmem_limit),
        ),
        cost_estimate=cost,
    )(x2d, w1p, b1p, w2p, b2p)

    # Slice away the row padding and the zero label columns.
    return out2d[:M, :L].reshape(B, T, L)


def reference_forward(features, w1, b1, w2, b2):
    h = jnp.tanh(features @ w1 + b1)
    return h @ w2 + b2


if __name__ == "__main__":
    key = jax.random.PRNGKey(0)

    # --- small shapes implied by the module: features [B, T, hidden_size] ----
    B, T, H, L = 2, 8, 32, 5
    k_x, k_w1, k_b1, k_w2, k_b2, k_rest = jax.random.split(key, 6)
    features = jax.random.normal(k_x, (B, T, H), dtype=jnp.float32)
    w1 = jax.random.normal(k_w1, (H, H), dtype=jnp.float32) * (1.0 / jnp.sqrt(H))
    b1 = jax.random.normal(k_b1, (H,), dtype=jnp.float32) * 0.01
    w2 = jax.random.normal(k_w2, (H, L), dtype=jnp.float32) * (1.0 / jnp.sqrt(H))
    b2 = jax.random.normal(k_b2, (L,), dtype=jnp.float32) * 0.01

    out = jax.block_until_ready(model_head_forward(features, w1, b1, w2, b2))
    ref = reference_forward(features, w1, b1, w2, b2)
    assert out.shape == (B, T, L)
    assert jnp.allclose(out, ref, atol=1e-5, rtol=1e-5), "f32 path mismatch"

    # --- exercise the chunked / bf16 path (H >= 256, tc < H -> grid_c > 1) ---
    B2, T2, H2, L2 = 2, 64, 256, 10
    k_x, k_w1, k_b1, k_w2, k_b2 = jax.random.split(k_rest, 5)
    f2 = jax.random.normal(k_x, (B2, T2, H2), dtype=jnp.float32)
    w1b = jax.random.normal(k_w1, (H2, H2), dtype=jnp.float32) * (1.0 / jnp.sqrt(H2))
    b1b = jax.random.normal(k_b1, (H2,), dtype=jnp.float32) * 0.01
    w2b = jax.random.normal(k_w2, (H2, L2), dtype=jnp.float32) * (1.0 / jnp.sqrt(H2))
    b2b = jax.random.normal(k_b2, (L2,), dtype=jnp.float32) * 0.01

    out2 = jax.block_until_ready(model_head_forward(f2, w1b, b1b, w2b, b2b, tc=128))
    ref2 = reference_forward(f2, w1b, b1b, w2b, b2b)
    assert out2.shape == (B2, T2, L2)
    # bf16 MXU inputs (f32 accumulation) -> looser tolerance vs f32 reference.
    assert jnp.allclose(out2, ref2, atol=5e-2, rtol=5e-2), "bf16/chunked mismatch"

    print("KERNEL_OK")
</pallas_src>

<mosaic_0001>
module attributes {stable_mosaic.version = 11 : i64} {
  func.func @_head_kernel(%arg0: i32, %arg1: i32, %arg2: memref<16x32xf32, #tpu.memory_space<vmem>>, %arg3: memref<32x32xf32, #tpu.memory_space<vmem>>, %arg4: memref<1x32xf32, #tpu.memory_space<vmem>>, %arg5: memref<32x128xf32, #tpu.memory_space<vmem>>, %arg6: memref<1x128xf32, #tpu.memory_space<vmem>>, %arg7: memref<16x128xf32, #tpu.memory_space<vmem>>, %arg8: memref<16x128xf32, #tpu.memory_space<vmem>>) attributes {dimension_semantics = [#tpu.dimension_semantics<parallel>, #tpu.dimension_semantics<arbitrary>], iteration_bounds = array<i64: 1, 1>, scalar_prefetch = 0 : i64, scratch_operands = 1 : i64, tpu.core_type = #tpu.core_type<tc>, window_params = [{transform_indices = @transform_0, window_bounds = array<i64: 16, 32>}, {transform_indices = @transform_1, window_bounds = array<i64: 32, 32>}, {transform_indices = @transform_2, window_bounds = array<i64: 1, 32>}, {transform_indices = @transform_3, window_bounds = array<i64: 32, 128>}, {pipeline_mode = #tpu.pipeline_mode<synchronous>, transform_indices = @transform_4, window_bounds = array<i64: 1, 128>}, {transform_indices = @transform_5, window_bounds = array<i64: 16, 128>}]} {
    %c0_i32 = arith.constant 0 : i32
    %0 = arith.cmpi eq, %arg1, %c0_i32 : i32
    %1 = arith.extui %0 : i1 to i32
    %c0_i32_0 = arith.constant 0 : i32
    %2 = arith.cmpi ne, %1, %c0_i32_0 : i32
    scf.if %2 {
      %cst_15 = arith.constant 0.000000e+00 : f32
      %18 = vector.broadcast %cst_15 : f32 to vector<16x128xf32>
      %c0_16 = arith.constant 0 : index
      %c0_17 = arith.constant 0 : index
      %19 = vector.load %arg8[%c0_16, %c0_17] : memref<16x128xf32, #tpu.memory_space<vmem>>, vector<16x128xf32>
      tpu.vector_store %arg8[%c0_16, %c0_17], %18 {strides = array<i32>} : memref<16x128xf32, #tpu.memory_space<vmem>>, vector<16x128xf32>,
    } else {
    }
    %c0 = arith.constant 0 : index
    %c0_1 = arith.constant 0 : index
    %3 = vector.load %arg2[%c0, %c0_1] : memref<16x32xf32, #tpu.memory_space<vmem>>, vector<16x32xf32>
    %c0_2 = arith.constant 0 : index
    %c0_3 = arith.constant 0 : index
    %4 = vector.load %arg3[%c0_2, %c0_3] : memref<32x32xf32, #tpu.memory_space<vmem>>, vector<32x32xf32>
    %cst = arith.constant dense<0.000000e+00> : vector<16x32xf32>
    %5 = tpu.matmul %3, %4, %cst {dimension_numbers = #tpu.dot_dimension_numbers<[1], [0], [0], [1], [0, 0, 1, 1], [], []>} : vector<16x32xf32>, vector<32x32xf32>, vector<16x32xf32> -> vector<16x32xf32>
    %c0_4 = arith.constant 0 : index
    %c0_5 = arith.constant 0 : index
    %6 = vector.load %arg4[%c0_4, %c0_5] : memref<1x32xf32, #tpu.memory_space<vmem>>, vector<1x32xf32>
    %7 = vector.broadcast %6 : vector<1x32xf32> to vector<16x32xf32>
    %8 = arith.addf %5, %7 : vector<16x32xf32>
    %9 = math.tanh %8 : vector<16x32xf32>
    %c0_6 = arith.constant 0 : index
    %c0_7 = arith.constant 0 : index
    %10 = vector.load %arg8[%c0_6, %c0_7] : memref<16x128xf32, #tpu.memory_space<vmem>>, vector<16x128xf32>
    %c0_8 = arith.constant 0 : index
    %c0_9 = arith.constant 0 : index
    %11 = vector.load %arg5[%c0_8, %c0_9] : memref<32x128xf32, #tpu.memory_space<vmem>>, vector<32x128xf32>
    %cst_10 = arith.constant dense<0.000000e+00> : vector<16x128xf32>
    %12 = tpu.matmul %9, %11, %cst_10 {dimension_numbers = #tpu.dot_dimension_numbers<[1], [0], [0], [1], [0, 0, 1, 1], [], []>} : vector<16x32xf32>, vector<32x128xf32>, vector<16x128xf32> -> vector<16x128xf32>
    %13 = arith.addf %10, %12 : vector<16x128xf32>
    %c0_11 = arith.constant 0 : index
    %c0_12 = arith.constant 0 : index
    %14 = vector.load %arg8[%c0_11, %c0_12] : memref<16x128xf32, #tpu.memory_space<vmem>>, vector<16x128xf32>
    tpu.vector_store %arg8[%c0_11, %c0_12], %13 {strides = array<i32>} : memref<16x128xf32, #tpu.memory_space<vmem>>, vector<16x128xf32>,
    %c0_i32_13 = arith.constant 0 : i32
    %15 = arith.cmpi eq, %arg1, %c0_i32_13 : i32
    %16 = arith.extui %15 : i1 to i32
    %c0_i32_14 = arith.constant 0 : i32
    %17 = arith.cmpi ne, %16, %c0_i32_14 : i32
    scf.if %17 {
      %c0_15 = arith.constant 0 : index
      %c0_16 = arith.constant 0 : index
      %18 = vector.load %arg8[%c0_15, %c0_16] : memref<16x128xf32, #tpu.memory_space<vmem>>, vector<16x128xf32>
      %c0_17 = arith.constant 0 : index
      %c0_18 = arith.constant 0 : index
      %19 = vector.load %arg6[%c0_17, %c0_18] : memref<1x128xf32, #tpu.memory_space<vmem>>, vector<1x128xf32>
      %20 = vector.broadcast %19 : vector<1x128xf32> to vector<16x128xf32>
      %21 = arith.addf %18, %20 : vector<16x128xf32>
      %c0_19 = arith.constant 0 : index
      %c0_20 = arith.constant 0 : index
      %22 = vector.load %arg7[%c0_19, %c0_20] : memref<16x128xf32, #tpu.memory_space<vmem>>, vector<16x128xf32>
      tpu.vector_store %arg7[%c0_19, %c0_20], %21 {strides = array<i32>} : memref<16x128xf32, #tpu.memory_space<vmem>>, vector<16x128xf32>,
    } else {
    }
    return
  }
  func.func @transform_0(%arg0: i32, %arg1: i32) -> (i32, i32) {
    %c0_i32 = arith.constant 0 : i32
    %c0_i32_0 = arith.constant 0 : i32
    return %arg0, %c0_i32 : i32, i32
  }
  func.func @transform_1(%arg0: i32, %arg1: i32) -> (i32, i32) {
    %c0_i32 = arith.constant 0 : i32
    %c0_i32_0 = arith.constant 0 : i32
    return %c0_i32, %arg1 : i32, i32
  }
  func.func @transform_2(%arg0: i32, %arg1: i32) -> (i32, i32) {
    %c0_i32 = arith.constant 0 : i32
    %c0_i32_0 = arith.constant 0 : i32
    return %c0_i32, %arg1 : i32, i32
  }
  func.func @transform_3(%arg0: i32, %arg1: i32) -> (i32, i32) {
    %c0_i32 = arith.constant 0 : i32
    %c0_i32_0 = arith.constant 0 : i32
    return %arg1, %c0_i32 : i32, i32
  }
  func.func @transform_4(%arg0: i32, %arg1: i32) -> (i32, i32) {
    %c0_i32 = arith.constant 0 : i32
    %c0_i32_0 = arith.constant 0 : i32
    %c0_i32_1 = arith.constant 0 : i32
    return %c0_i32, %c0_i32_0 : i32, i32
  }
  func.func @transform_5(%arg0: i32, %arg1: i32) -> (i32, i32) {
    %c0_i32 = arith.constant 0 : i32
    %c0_i32_0 = arith.constant 0 : i32
    return %arg0, %c0_i32 : i32, i32
  }
}

</mosaic_0001>

<bundles_post_ra>
// kernel: tpu_custom_call.1
= control target key start
LH: loop header
LB: loop body
LE: loop exit
PB: predicated region body
PF: predicated region fallthrough
CT: control target
= control target key end

     0   :  { %10 = vsyncpa [#allocation4], 0  ;;  %s655_s0 = inlined_call_operand.hbm [shape: f32[16,32], index: 0, kind: input, shape index: {}]   ;;  %s656_s1 = inlined_call_operand.hbm [shape: f32[32,32], index: 1, kind: input, shape index: {}]   ;;  %s657_s2 = inlined_call_operand.hbm [shape: f32[1,32], index: 2, kind: input, shape index: {}]   ;;  %s658_s3 = inlined_call_operand.hbm [shape: f32[32,128], index: 3, kind: input, shape index: {}]   ;;  %s659_s4 = inlined_call_operand.hbm [shape: f32[1,128], index: 4, kind: input, shape index: {}]   ;;  %s660_s5 = inlined_call_operand.hbm [shape: f32[16,128], index: 5, kind: output, shape index: {}]  }
   0x1   :  { %11 = vsyncpa [#allocation7], 0 }
   0x2   :  { %12 = vsyncpa [#allocation10], 0 }
   0x3   :  { %13 = vsyncpa [#allocation5], 0  ;;  %s522_s18 = smov [#allocation6]   ;;  %s523_s20 = smov [#allocation9]  }
   0x4   :  { %s31_s19 = sshll.u32 %s522_s18, 4  ;;  %s53_s21 = sshll.u32 %s523_s20, 4  ;;  %s32_s19 = int_to_ptr.vmem [resolvable:$true] %s31_s19  ;;  %s560_s21 = int_to_ptr.vmem [resolvable:$true] %s53_s21 }
   0x5   :  { %s382_s24 = scalar_lea.hbm %s656_s1, 512 }
   0x6   :  { %p383_p0 = scmp.ne.s32.totalorder %s656_s1, %s382_s24  ;;  %p386_p1 = scmp.lt.u32.totalorder %s382_s24, %s656_s1 }
   0x8   :  { %p388_p2 = pnand %p386_p1, %p383_p0 }
   0xa   :  { %391 = shalt.err (!%p388_p2)
}
   0xb   :  { %s392_s29 = scalar_lea.vmem %s32_s19, 512  ;;  %p397_p4 = scmp.lt.s32.totalorder %s32_s19, %s32_s19 }
   0xc   :  { %p393_p3 = scmp.ne.s32.totalorder %s32_s19, %s392_s29  ;;  %p398_p5 = scmp.lt.s32.totalorder %s392_s29, %s392_s29 }
   0xe   :  { %p399_p6 = por %p398_p5, %p397_p4 }
  0x10   :  { %p400_p7 = pnand %p399_p6, %p393_p3 }
  0x12   :  { %403 = shalt.err (!%p400_p7)
}
  0x13   :  { %s524_s30 = smov 128   ;;  %s525_s6 = smov 8  }
  0x14   :  { %37 = dma.hbm_to_vmem [thread:$0]  %s656_s1, 512, %s32_s19, [#allocation7], %s524_s30, %s524_s30, %s525_s6  }
  0x15   :  { %s404_s11 = scalar_lea.hbm %s658_s3, 512 }
  0x16   :  { %p405_p8 = scmp.ne.s32.totalorder %s658_s3, %s404_s11  ;;  %p408_p9 = scmp.lt.u32.totalorder %s404_s11, %s658_s3 }
  0x18   :  { %p410_p10 = pnand %p408_p9, %p405_p8 }
  0x1a   :  { %413 = shalt.err (!%p410_p10)
}
  0x1b   :  { %s414_s16 = scalar_lea.vmem %s560_s21, 512  ;;  %p419_p12 = scmp.lt.s32.totalorder %s560_s21, %s560_s21 }
  0x1c   :  { %p415_p11 = scmp.ne.s32.totalorder %s560_s21, %s414_s16  ;;  %p420_p13 = scmp.lt.s32.totalorder %s414_s16, %s414_s16 }
  0x1e   :  { %p421_p0 = por %p420_p13, %p419_p12 }
  0x20   :  { %p422_p1 = pnand %p421_p0, %p415_p11 }
  0x22   :  { %425 = shalt.err (!%p422_p1)
}
  0x23   :  { %59 = dma.hbm_to_vmem [thread:$0]  %s658_s3, 512, %s560_s21, [#allocation10], %s524_s30, %s524_s30, %s525_s6  }
  0x24   :  { %s526_s18 = smov [#allocation3]   ;;  %s527_s20 = smov [#allocation8]  }
  0x25   :  { %s19_s19 = sshll.u32 %s526_s18, 4  ;;  %s44_s22 = sshll.u32 %s527_s20, 4  ;;  %s20_s19 = int_to_ptr.vmem [resolvable:$true] %s19_s19  ;;  %s45_s22 = int_to_ptr.vmem [resolvable:$true] %s44_s22 }
  0x26   :  { %s426_s25 = scalar_lea.hbm %s655_s0, 256 }
  0x27   :  { %p427_p2 = scmp.ne.s32.totalorder %s655_s0, %s426_s25  ;;  %p430_p3 = scmp.lt.u32.totalorder %s426_s25, %s655_s0 }
  0x29   :  { %p432_p4 = pnand %p430_p3, %p427_p2 }
  0x2b   :  { %435 = shalt.err (!%p432_p4)
}
  0x2c   :  { %s436_s3 = scalar_lea.vmem %s20_s19, 256  ;;  %p441_p6 = scmp.lt.s32.totalorder %s20_s19, %s20_s19 }
  0x2d   :  { %p437_p5 = scmp.ne.s32.totalorder %s20_s19, %s436_s3  ;;  %p442_p7 = scmp.lt.s32.totalorder %s436_s3, %s436_s3 }
  0x2f   :  { %p443_p8 = por %p442_p7, %p441_p6 }
  0x31   :  { %p444_p9 = pnand %p443_p8, %p437_p5 }
  0x33   :  { %447 = shalt.err (!%p444_p9)
}
  0x34   :  { %25 = dma.hbm_to_vmem [thread:$0]  %s655_s0, 256, %s20_s19, [#allocation4], %s524_s30, %s524_s30, %s525_s6  }
  0x35   :  { %s448_s10 = scalar_lea.hbm %s657_s2, 16 }
  0x36   :  { %p449_p10 = scmp.ne.s32.totalorder %s657_s2, %s448_s10  ;;  %p452_p11 = scmp.lt.u32.totalorder %s448_s10, %s657_s2 }
  0x38   :  { %p454_p12 = pnand %p452_p11, %p449_p10 }
  0x3a   :  { %457 = shalt.err (!%p454_p12)
}
  0x3b   :  { %s458_s15 = scalar_lea.vmem %s45_s22, 16  ;;  %s462_s16 = scalar_lea.vmem %s45_s22, 32 }
  0x3c   :  { %p459_p13 = scmp.ne.s32.totalorder %s45_s22, %s458_s15  ;;  %p463_p0 = scmp.lt.s32.totalorder %s45_s22, %s45_s22 }
  0x3d   :  { %p464_p1 = scmp.lt.s32.totalorder %s462_s16, %s458_s15 }
  0x3f   :  { %p465_p2 = por %p464_p1, %p463_p0 }
  0x41   :  { %p466_p3 = pnand %p465_p2, %p459_p13 }
  0x43   :  { %469 = shalt.err (!%p466_p3)
}
  0x44   :  { %47 = dma.hbm_to_vmem [thread:$0]  %s657_s2, 16, %s45_s22, [#allocation7]  }
  0x45   :  { %s528_s17 = smov [#allocation11]   ;;  %s470_s23 = scalar_lea.hbm %s659_s4, 16 }
  0x46   :  { %s66_s18 = sshll.u32 %s528_s17, 4  ;;  %p471_p4 = scmp.ne.s32.totalorder %s659_s4, %s470_s23  ;;  %s67_s18 = int_to_ptr.vmem [resolvable:$true] %s66_s18 }
  0x47   :  { %p474_p5 = scmp.lt.u32.totalorder %s470_s23, %s659_s4 }
  0x49   :  { %p476_p6 = pnand %p474_p5, %p471_p4 }
  0x4b   :  { %479 = shalt.err (!%p476_p6)
}
  0x4c   :  { %s480_s28 = scalar_lea.vmem %s67_s18, 16  ;;  %s484_s2 = scalar_lea.vmem %s67_s18, 32 }
  0x4d   :  { %p481_p7 = scmp.ne.s32.totalorder %s67_s18, %s480_s28  ;;  %p485_p8 = scmp.lt.s32.totalorder %s67_s18, %s67_s18 }
  0x4e   :  { %p486_p9 = scmp.lt.s32.totalorder %s484_s2, %s480_s28 }
  0x50   :  { %p487_p10 = por %p486_p9, %p485_p8 }
  0x52   :  { %p488_p11 = pnand %p487_p10, %p481_p7 }
  0x54   :  { %491 = shalt.err (!%p488_p11)
}
  0x55   :  { %69 = dma.hbm_to_vmem [thread:$0]  %s659_s4, 16, %s67_s18, [#allocation10]  }
  0x56   :  { %514 = dma.done.wait [#allocation4], 256  }
  0x57   :  { %515 = vsyncadd [#allocation4], 4294967040 }
  0x58   :  { %516 = dma.done.wait [#allocation7], 528  }
  0x59   :  { %517 = vsyncadd [#allocation7], 4294966768 }
  0x5a   :  { %518 = dma.done.wait [#allocation10], 528  }
  0x5b   :  { %519 = vsyncadd [#allocation10], 4294966768  ;;  %vm104_vm0 = vcmask 261120   ;;  %v93_v0 = vld [vmem:[#allocation6] sm:$0xff]  ;;  %v94_v1 = vld [vmem:[#allocation6 + $0x8] sm:$0xff]  ;;  %s529_s4 = smov [#allocation12]  }
  0x5c   :  { %v95_v2 = vld [vmem:[#allocation6 + $0x10] sm:$0xff]  ;;  %v354_v3 = vpack.c.bf16 %v94_v1, %v93_v0  ;;  %v96_v4 = vld [vmem:[#allocation6 + $0x18] sm:$0xff]  ;;  %v190_v8 = vld [vmem:[#allocation9] sm:$0xff]  ;;  %s300_s3 = sshll.u32 %s529_s4, 4  ;;  %s301_s3 = int_to_ptr.vmem [resolvable:$true] %s300_s3 }
  0x5d   :  { %v91_v5 = vld [vmem:[#allocation3] sm:$0xff]  ;;  %v358_v6 = vpack.c.bf16 %v96_v4, %v95_v2  ;;  %v92_v7 = vld [vmem:[#allocation3 + $0x8] sm:$0xff]  ;;  %v314_v14 = vld [vmem:[#allocation8] ss:$0 sm:$0xff]  ;;  %s492_s21 = scalar_lea.vmem %s301_s3, 256  ;;  %p497_p13 = scmp.lt.s32.totalorder %s301_s3, %s301_s3 }
  0x5e   :  { %340 = vmatprep.mubr.msk.f32.mxu0 %vm104_vm0, %v91_v5  ;;  %355 = vmatprep.subr.bf16.mxu0 %v354_v3  ;;  %v191_v9 = vld [vmem:[#allocation9 + $0x8] sm:$0xff]  ;;  %v192_v10 = vld [vmem:[#allocation9 + $0x10] sm:$0xff]  ;;  %v193_v12 = vld [vmem:[#allocation9 + $0x18] sm:$0xff]  ;;  %p493_p12 = scmp.ne.s32.totalorder %s301_s3, %s492_s21  ;;  %p498_p0 = scmp.lt.s32.totalorder %s492_s21, %s492_s21 }
  0x5f   :  { %357 = vmatpush3.bf16.msra.mxu0 %v354_v3  ;;  %v362_v11 = vpack.c.bf16 %v191_v9, %v190_v8  ;;  %v366_v13 = vpack.c.bf16 %v193_v12, %v192_v10  ;;  %v319_v21 = vld [vmem:[#allocation11] ss:$0 sm:$0xff] }
  0x60   :  { %359 = vmatprep.subr.bf16.mxu0 %v358_v6  ;;  %p499_p1 = por %p498_p0, %p497_p13 }
  0x61   :  { %363 = vmatprep.subr.bf16.mxu1 %v362_v11 }
  0x62   :  { %365 = vmatpush3.bf16.msra.mxu1 %v362_v11  ;;  %p500_p2 = pnand %p499_p1, %p493_p12 }
  0x63   :  { %361 = vmatpush3.bf16.msra.mxu0 %v358_v6  ;;  %367 = vmatprep.subr.bf16.mxu1 %v366_v13 }
  0x66   :  { %341 = vmatmul.mubr.msk.f32.vlgmr.msra.gmra.mrb[0].mxu0 %vm104_vm0, %v92_v7  ;;  %369 = vmatpush3.bf16.msra.mxu1 %v366_v13 }
 0x139   :  { %v342_v15 = vpop.f32.mrb[0].mxu0 }
 0x13a   :  { %v183_v16 = vadd.f32 %v342_v15, %v314_v14  ;;  %v177_v17 = vpop.f32.mrb[1].mxu0 }
 0x13b   :  { %v178_v18 = vadd.f32 %v314_v14, %v177_v17 }
 0x13d   :  { %378 = vtanh.f32 %v178_v18 }
 0x13e   :  { %380 = vtanh.f32 %v183_v16 }
 0x147   :  { %v379_v19 = vpop.eup %378 }
 0x148   :  { %v381_v20 = vpop.eup %380  ;;  %351 = vmatprep.mubr.msk.f32.mxu1 %vm104_vm0, %v379_v19 }
 0x149   :  { %352 = vmatmul.mubr.msk.f32.vlgmr.msra.gmra.mrb[0].mxu1 %vm104_vm0, %v381_v20 }
 0x21c   :  { %v353_v22 = vpop.f32.mrb[0].mxu1 }
 0x21d   :  { %v292_v23 = vadd.f32 %v353_v22, %v319_v21  ;;  %v266_v24 = vpop.f32.mrb[1].mxu1 }
 0x21e   :  { %v291_v25 = vadd.f32 %v319_v21, %v266_v24 }
 0x21f   :  { %294 = vst [vmem:[#allocation12 + $0x8] sm:$0xff] %v292_v23 }
 0x220   :  { %293 = vst [vmem:[#allocation12] sm:$0xff] %v291_v25 }
 0x221   :  { %503 = shalt.err (!%p500_p2)
}
 0x222   :  { %s504_s9 = scalar_lea.hbm %s660_s5, 256 }
 0x223   :  { %p505_p3 = scmp.ne.s32.totalorder %s660_s5, %s504_s9  ;;  %p508_p4 = scmp.lt.u32.totalorder %s504_s9, %s660_s5 }
 0x225   :  { %p510_p5 = pnand %p508_p4, %p505_p3 }
 0x227   :  { %513 = shalt.err (!%p510_p5)
}
 0x228   :  { %306 = dma.vmem_to_hbm [thread:$0]  %s301_s3, 256, %s660_s5, [#allocation5], %s524_s30, %s524_s30, %s525_s6  }
 0x229   :  { %520 = dma.done.wait [#allocation5], 256  }
 0x22a   :  { %521 = vsyncadd [#allocation5], 4294967040 }
 0x22b   :  { %310 = vsyncpa [#allocation4], 1 }
 0x22c   :  { %311 = vsyncpa [#allocation7], 1 }
 0x22d   :  { %312 = vsyncpa [#allocation10], 1 }
 0x22e   :  { %313 = vsyncpa [#allocation5], 1 }

</bundles_post_ra>
